<compile_context>
chip_gen: v7x
topology: tpu7x:2x2x1
jax: 0.10.0
libtpu: 0.0.40
codegen_flags: <defaults>
</compile_context>

<pallas_src>
import jax
import jax.numpy as jnp
from jax.experimental import pallas as pl
from jax.experimental.pallas import tpu as pltpu

LANES = 128        # lane width of a vreg
TILE_ROWS = 512    # rows per block in the gridded path: (512, 128) f32 = 256 KiB


def linear_kernel(w_ref, b_ref, x_ref, o_ref):
    # w_ref / b_ref live in SMEM -> scalar loads; x_ref / o_ref are lane-dense
    # (rows, 128) VMEM tiles.  Compute in f32 on the VPU, cast back on store.
    w = w_ref[0, 0]
    b = b_ref[0, 0]
    xv = x_ref[...].astype(jnp.float32)
    o_ref[...] = (xv * w + b).astype(o_ref.dtype)


def linear_forward(x, weight, bias):
    """x: (N, 1), weight: (1, 1), bias: (1,) or (1, 1) -> (N, 1).

    Matches torch.nn.Linear(1, 1): y = x @ W^T + b.
    """
    assert weight.shape == (1, 1), f"expected (1,1) weight, got {weight.shape}"
    assert bias.shape in ((1,), (1, 1)), f"expected (1,) or (1,1) bias, got {bias.shape}"
    assert x.ndim == 2 and x.shape[1] == 1, f"expected (N,1) input, got {x.shape}"

    n = x.shape[0]
    dtype = x.dtype
    w2d = weight.reshape(1, 1).astype(jnp.float32)
    b2d = bias.reshape(1, 1).astype(jnp.float32)

    # Lane-dense slab: pad N up to a multiple of 128 and fold onto (rows, 128).
    n_pad = ((n + LANES - 1) // LANES) * LANES
    rows = n_pad // LANES
    x_flat = x.reshape(n)
    if n_pad != n:
        x_flat = jnp.pad(x_flat, (0, n_pad - n))
    x_slab = x_flat.reshape(rows, LANES)

    if rows <= TILE_ROWS:
        # Single full-array block: nothing to pipeline at this size.
        y_slab = pl.pallas_call(
            linear_kernel,
            out_shape=jax.ShapeDtypeStruct((rows, LANES), dtype),
            in_specs=[
                pl.BlockSpec(memory_space=pltpu.SMEM),   # weight: scalar path
                pl.BlockSpec(memory_space=pltpu.SMEM),   # bias: scalar path
                pl.BlockSpec(memory_space=pltpu.VMEM),   # x: full (rows, 128)
            ],
            out_specs=pl.BlockSpec(memory_space=pltpu.VMEM),
            cost_estimate=pl.CostEstimate(
                flops=2 * rows * LANES,
                transcendentals=0,
                bytes_accessed=4 * (2 * rows * LANES + 2),
            ),
        )(w2d, b2d, x_slab)
        y_slab = y_slab[:rows]
    else:
        # Tiled grid: (512, 128) blocks, double-buffered pipeline, rows sharded
        # across TensorCores via the "parallel" axis (v7x megacore).
        rows_pad = ((rows + TILE_ROWS - 1) // TILE_ROWS) * TILE_ROWS
        if rows_pad != rows:
            x_slab = jnp.pad(x_slab, ((0, rows_pad - rows), (0, 0)))
        grid = (rows_pad // TILE_ROWS,)
        y_slab = pl.pallas_call(
            linear_kernel,
            out_shape=jax.ShapeDtypeStruct((rows_pad, LANES), dtype),
            grid=grid,
            in_specs=[
                pl.BlockSpec(memory_space=pltpu.SMEM),   # weight: scalar path
                pl.BlockSpec(memory_space=pltpu.SMEM),   # bias: scalar path
                pl.BlockSpec((TILE_ROWS, LANES), lambda i: (i, 0)),
            ],
            out_specs=pl.BlockSpec((TILE_ROWS, LANES), lambda i: (i, 0)),
            compiler_params=pltpu.CompilerParams(
                dimension_semantics=("parallel",),
            ),
            cost_estimate=pl.CostEstimate(
                flops=2 * rows_pad * LANES,
                transcendentals=0,
                bytes_accessed=4 * (2 * rows_pad * LANES + 2),
            ),
        )(w2d, b2d, x_slab)
        y_slab = y_slab[:rows]

    return y_slab.reshape(n_pad, 1)[:n]


if __name__ == "__main__":
    key = jax.random.PRNGKey(0)
    kx, kw, kb = jax.random.split(key, 3)

    # Parameters for Linear(1, 1): weight (1, 1), bias (1,) — same as torch.
    weight = jax.random.normal(kw, (1, 1), dtype=jnp.float32)
    bias = jax.random.normal(kb, (1,), dtype=jnp.float32)

    # Small batch of scalar inputs: x has shape (8, 1)
    x = jax.random.normal(kx, (8, 1), dtype=jnp.float32)

    y = linear_forward(x, weight, bias)
    y = jax.block_until_ready(y)

    y_ref = x @ weight.T + bias
    assert y.shape == (8, 1)
    assert jnp.allclose(y, y_ref, atol=1e-6), "mismatch vs reference (N=8)"

    # Extra check: a batch that is not a multiple of 128 exercises the
    # lane-padding + slice-back path.
    x2 = jax.random.normal(kx, (300, 1), dtype=jnp.float32)
    y2 = jax.block_until_ready(linear_forward(x2, weight, bias))
    y2_ref = x2 @ weight.T + bias
    assert y2.shape == (300, 1)
    assert jnp.allclose(y2, y2_ref, atol=1e-6), "mismatch vs reference (N=300)"

    print("KERNEL_OK")
</pallas_src>

<mosaic_0001>
module attributes {stable_mosaic.version = 11 : i64} {
  func.func @linear_kernel(%arg0: memref<1x1xf32, #tpu.memory_space<smem>>, %arg1: memref<1x1xf32, #tpu.memory_space<smem>>, %arg2: memref<1x128xf32, #tpu.memory_space<vmem>>, %arg3: memref<1x128xf32, #tpu.memory_space<vmem>>) attributes {dimension_semantics = [], scalar_prefetch = 0 : i64, scratch_operands = 0 : i64, tpu.core_type = #tpu.core_type<tc>} {
    %c0 = arith.constant 0 : index
    %c0_0 = arith.constant 0 : index
    %0 = memref.load %arg0[%c0, %c0_0] : memref<1x1xf32, #tpu.memory_space<smem>>
    %c0_1 = arith.constant 0 : index
    %c0_2 = arith.constant 0 : index
    %1 = memref.load %arg1[%c0_1, %c0_2] : memref<1x1xf32, #tpu.memory_space<smem>>
    %c0_3 = arith.constant 0 : index
    %c0_4 = arith.constant 0 : index
    %2 = vector.load %arg2[%c0_3, %c0_4] : memref<1x128xf32, #tpu.memory_space<vmem>>, vector<1x128xf32>
    %3 = vector.broadcast %0 : f32 to vector<1x128xf32>
    %4 = arith.mulf %2, %3 : vector<1x128xf32>
    %5 = vector.broadcast %1 : f32 to vector<1x128xf32>
    %6 = arith.addf %4, %5 : vector<1x128xf32>
    %c0_5 = arith.constant 0 : index
    %c0_6 = arith.constant 0 : index
    %7 = vector.load %arg3[%c0_5, %c0_6] : memref<1x128xf32, #tpu.memory_space<vmem>>, vector<1x128xf32>
    tpu.vector_store %arg3[%c0_5, %c0_6], %6 {strides = array<i32>} : memref<1x128xf32, #tpu.memory_space<vmem>>, vector<1x128xf32>,
    return
  }
}

</mosaic_0001>

<bundles_post_ra>
// kernel: tpu_custom_call.1
= control target key start
LH: loop header
LB: loop body
LE: loop exit
PB: predicated region body
PF: predicated region fallthrough
CT: control target
= control target key end

     0   :  { %s106_s0 = inlined_call_operand.<no memory space> [shape: f32[1,1], index: 0, kind: input, shape index: {}]   ;;  %s107_s1 = inlined_call_operand.<no memory space> [shape: f32[1,1], index: 1, kind: input, shape index: {}]   ;;  %s108_s2 = inlined_call_operand.vmem [shape: f32[1,128], index: 2, kind: input, shape index: {}]   ;;  %s109_s3 = inlined_call_operand.hbm [shape: f32[1,128], index: 3, kind: output, shape index: {}]  }
   0x1   :  { %v19_v0 = vld [vmem:[%s108_s2] sm:$0x1]  ;;  %v20_v1 = vstv %s106_s0  ;;  %v22_v2 = vstv %s107_s1 }
   0x2   :  { %10 = vsyncpa [#allocation5], 0  ;;  %v21_v3 = vmul.f32 %v20_v1, %v19_v0  ;;  %s64_s18 = smov [#allocation4]  }
   0x3   :  { %s31_s19 = sshll.u32 %s64_s18, 4  ;;  %s32_s19 = int_to_ptr.vmem [resolvable:$true] %s31_s19 }
   0x4   :  { %v23_v4 = vadd.f32 %v22_v2, %v21_v3  ;;  %s40_s20 = scalar_lea.vmem %s32_s19, 16  ;;  %s44_s21 = scalar_lea.vmem %s32_s19, 32 }
   0x5   :  { %p41_p0 = scmp.ne.s32.totalorder %s32_s19, %s40_s20  ;;  %p45_p1 = scmp.lt.s32.totalorder %s32_s19, %s32_s19 }
   0x6   :  { %24 = vst [vmem:[#allocation4] sm:$0x1] %v23_v4  ;;  %p46_p2 = scmp.lt.s32.totalorder %s44_s21, %s40_s20 }
   0x8   :  { %p47_p3 = por %p46_p2, %p45_p1 }
   0xa   :  { %p48_p4 = pnand %p47_p3, %p41_p0 }
   0xc   :  { %51 = shalt.err (!%p48_p4)
}
   0xd   :  { %s52_s22 = scalar_lea.hbm %s109_s3, 16 }
   0xe   :  { %p53_p5 = scmp.ne.s32.totalorder %s109_s3, %s52_s22  ;;  %p56_p6 = scmp.lt.u32.totalorder %s52_s22, %s109_s3 }
  0x10   :  { %p58_p7 = pnand %p56_p6, %p53_p5 }
  0x12   :  { %61 = shalt.err (!%p58_p7)
}
  0x13   :  { %34 = dma.vmem_to_hbm [thread:$0]  %s32_s19, 16, %s109_s3, [#allocation5]  }
  0x14   :  { %62 = dma.done.wait [#allocation5], 16  }
  0x15   :  { %63 = vsyncadd [#allocation5], 4294967280 }
  0x16   :  { %38 = vsyncpa [#allocation5], 1 }

</bundles_post_ra>
